<compile_context>
chip_gen: v5e
topology: v5e:2x2
jax: 0.10.0
libtpu: 0.0.40
codegen_flags: <defaults>
</compile_context>

<pallas_src>
import functools

import numpy as np
import jax
import jax.numpy as jnp
from jax import lax
from jax.experimental import pallas as pl
from jax.experimental.pallas import tpu as pltpu


# ------------------------------- Pallas kernel -------------------------------
def _attention_kernel(x_ref, wq_ref, wk_ref, wv_ref, wout_ref, bout_ref,
                      o_ref, q_s, k_s, v_s, *, bblk, seq, heads, dim_head):
    """Fused MHA for one block of `bblk` batch elements (channels-last).

    x_ref:    (bblk, N, C)   bf16  activations
    wq/wk/wv: (C, hid)       bf16  per-slab qkv weights (q pre-scaled)
    wout_ref: (hid, C)       bf16  to_out weight (transposed)
    bout_ref: (1, C)         f32   to_out bias
    o_ref:    (bblk, N, C)   f32   output
    q_s/k_s/v_s: (bblk, N, hid) bf16 VMEM scratch
    """
    C = o_ref.shape[-1]
    hid = heads * dim_head
    m = bblk * seq

    # Big lane-dense projections over the whole batch block: (M, C) x (C, 128).
    x2 = x_ref[...].reshape(m, C)                                    # bf16
    q_s[...] = jnp.dot(x2, wq_ref[...], preferred_element_type=jnp.float32
                       ).reshape(bblk, seq, hid).astype(jnp.bfloat16)
    k_s[...] = jnp.dot(x2, wk_ref[...], preferred_element_type=jnp.float32
                       ).reshape(bblk, seq, hid).astype(jnp.bfloat16)
    v_s[...] = jnp.dot(x2, wv_ref[...], preferred_element_type=jnp.float32
                       ).reshape(bblk, seq, hid).astype(jnp.bfloat16)

    w_o = wout_ref[...]                                              # (hid, C) bf16
    # Hoisted bias broadcast (never re-materialized inside the loop).
    bias = jnp.broadcast_to(bout_ref[...], (seq, C)).astype(jnp.float32)

    def per_batch(b, carry):
        qb = q_s[b]                                                  # (N, hid) bf16
        kb = k_s[b]
        vb = v_s[b]
        acc = bias                                                   # (N, C) f32
        for h in range(heads):                                       # static, 4 iters
            c0, c1 = h * dim_head, (h + 1) * dim_head
            # scale already folded into the q weights in the wrapper
            sim = lax.dot_general(qb[:, c0:c1], kb[:, c0:c1],
                                  (((1,), (1,)), ((), ())),
                                  preferred_element_type=jnp.float32)  # (N, N)
            sim = sim - jnp.max(sim, axis=-1, keepdims=True)
            p = jnp.exp(sim)
            p = p * pl.reciprocal(jnp.sum(p, axis=-1, keepdims=True),
                                  approx=True)                        # softmax, f32
            oh = jnp.dot(p.astype(jnp.bfloat16), vb[:, c0:c1],
                         preferred_element_type=jnp.float32)          # (N, Dh)
            # Accumulate straight into the out-projection (no head concat);
            # w_o row slab is 128-lane dense and sublane-aligned.
            acc = acc + jnp.dot(oh.astype(jnp.bfloat16), w_o[c0:c1, :],
                                preferred_element_type=jnp.float32)   # (N, C)
        o_ref[b] = acc
        return carry

    lax.fori_loop(0, bblk, per_batch, 0, unroll=True)


# --------------------------------- wrapper -----------------------------------
def _pick_block_b(B, N):
    """Largest divisor of B with block_b*N <= ~256 rows (fills the MXU rows on
    v6e/v7x, >=128 on v5e). For large B this naturally keeps >=2 grid steps so
    both v7x TensorCores get work."""
    target = max(1, (256 + N - 1) // N)
    best = 1
    for d in range(1, B + 1):
        if B % d == 0 and d <= target:
            best = d
    return best


def attention_pallas(x, w_qkv, w_out, b_out, *, heads, dim_head, block_b=None):
    """x: (B, C, N) float32 (PyTorch NCL). Returns (B, C, N) float32."""
    B, C, N = x.shape
    hid = heads * dim_head
    scale = dim_head ** -0.5
    if block_b is None:
        block_b = _pick_block_b(B, N)
    grid = (B // block_b,)

    # Layout plumbing (channels-last, bf16 MXU operands, scale folded into the
    # q weights). NOTE: in a real model these weight transforms are constant
    # across calls and should be cached / hoisted out of the per-call path.
    xt = jnp.transpose(x, (0, 2, 1)).astype(jnp.bfloat16)            # (B, N, C)
    w_qkv_t = jnp.transpose(w_qkv, (1, 0))                           # (C, 3*hid)
    wq = (w_qkv_t[:, 0 * hid:1 * hid] * scale).astype(jnp.bfloat16)  # (C, hid)
    wk = w_qkv_t[:, 1 * hid:2 * hid].astype(jnp.bfloat16)
    wv = w_qkv_t[:, 2 * hid:3 * hid].astype(jnp.bfloat16)
    wout_t = jnp.transpose(w_out, (1, 0)).astype(jnp.bfloat16)       # (hid, C)
    bout = b_out.reshape(1, C).astype(jnp.float32)

    kernel = functools.partial(_attention_kernel, bblk=block_b, seq=N,
                               heads=heads, dim_head=dim_head)
    out = pl.pallas_call(
        kernel,
        out_shape=jax.ShapeDtypeStruct((B, N, C), jnp.float32),
        grid=grid,
        in_specs=[
            pl.BlockSpec((block_b, N, C), lambda i: (i, 0, 0)),
            pl.BlockSpec((C, hid), lambda i: (0, 0)),     # constant block ->
            pl.BlockSpec((C, hid), lambda i: (0, 0)),     # weights DMA'd once
            pl.BlockSpec((C, hid), lambda i: (0, 0)),
            pl.BlockSpec((hid, C), lambda i: (0, 0)),
            pl.BlockSpec((1, C), lambda i: (0, 0)),
        ],
        out_specs=pl.BlockSpec((block_b, N, C), lambda i: (i, 0, 0)),
        scratch_shapes=[pltpu.VMEM((block_b, N, hid), jnp.bfloat16)] * 3,
        compiler_params=pltpu.CompilerParams(
            dimension_semantics=("parallel",)),
    )(xt, wq, wk, wv, wout_t, bout)
    # TODO(synk): a fused consumer could absorb this NLC->NCL transpose.
    return jnp.transpose(out, (0, 2, 1))                             # (B, C, N)


# ------------------------- pure-JAX reference (spec) --------------------------
def attention_ref(x, w_qkv, w_out, b_out, *, heads, dim_head):
    """Mirror of PyTorch Attention.forward (Conv1d k=1 == pointwise matmul),
    with the same bf16 MXU operands / f32 accumulation as the kernel."""
    B, C, N = x.shape
    hid = heads * dim_head
    scale = dim_head ** -0.5
    qkv = jnp.einsum('oc,bcn->bon', w_qkv.astype(jnp.bfloat16),
                     x.astype(jnp.bfloat16),
                     preferred_element_type=jnp.float32)             # (B, 3*hid, N)
    q, k, v = jnp.split(qkv, 3, axis=1)
    q = q.reshape(B, heads, dim_head, N)                             # b (h c) n -> b h c n
    k = k.reshape(B, heads, dim_head, N)
    v = v.reshape(B, heads, dim_head, N)
    sim = scale * jnp.einsum('bhdi,bhdj->bhij', q.astype(jnp.bfloat16),
                             k.astype(jnp.bfloat16),
                             preferred_element_type=jnp.float32)
    attn = jax.nn.softmax(sim, axis=-1)
    out = jnp.einsum('bhij,bhdj->bhid', attn.astype(jnp.bfloat16),
                     v.astype(jnp.bfloat16),
                     preferred_element_type=jnp.float32)             # (B, H, N, Dh)
    out = jnp.transpose(out, (0, 1, 3, 2)).reshape(B, hid, N)        # b h n d -> b (h d) n
    return jnp.einsum('oc,bcn->bon', w_out.astype(jnp.bfloat16),
                      out.astype(jnp.bfloat16),
                      preferred_element_type=jnp.float32) + b_out.reshape(1, C, 1)


# ----------------------------------- main ------------------------------------
if __name__ == "__main__":
    B, C, N = 2, 128, 16          # batch, channels (dim), sequence length
    HEADS, DIM_HEAD = 4, 32       # module defaults -> hidden_dim = 128
    HID = HEADS * DIM_HEAD

    key = jax.random.PRNGKey(0)
    k_x, k_wq, k_wo, k_bo = jax.random.split(key, 4)
    x = jax.random.normal(k_x, (B, C, N), jnp.float32)
    # Conv1d(kernel_size=1) weights with the trailing length-1 dim squeezed:
    w_qkv = jax.random.normal(k_wq, (3 * HID, C), jnp.float32) * (C ** -0.5)
    w_out = jax.random.normal(k_wo, (C, HID), jnp.float32) * (HID ** -0.5)
    b_out = jax.random.normal(k_bo, (C,), jnp.float32) * 0.1

    out = attention_pallas(x, w_qkv, w_out, b_out,
                           heads=HEADS, dim_head=DIM_HEAD)
    out = jax.block_until_ready(out)

    ref = jax.block_until_ready(
        attention_ref(x, w_qkv, w_out, b_out, heads=HEADS, dim_head=DIM_HEAD))

    assert out.shape == (B, C, N)
    assert np.all(np.isfinite(np.asarray(out))), "output contains non-finite values"
    np.testing.assert_allclose(np.asarray(out), np.asarray(ref),
                               rtol=2e-2, atol=2e-2)
    print("KERNEL_OK")
</pallas_src>

<mosaic_0001>
module attributes {stable_mosaic.version = 11 : i64} {
  func.func @_attention_kernel(%arg0: i32, %arg1: memref<2x16x128xbf16, #tpu.memory_space<vmem>>, %arg2: memref<128x128xbf16, #tpu.memory_space<vmem>>, %arg3: memref<128x128xbf16, #tpu.memory_space<vmem>>, %arg4: memref<128x128xbf16, #tpu.memory_space<vmem>>, %arg5: memref<128x128xbf16, #tpu.memory_space<vmem>>, %arg6: memref<1x128xf32, #tpu.memory_space<vmem>>, %arg7: memref<2x16x128xf32, #tpu.memory_space<vmem>>, %arg8: memref<2x16x128xbf16, #tpu.memory_space<vmem>>, %arg9: memref<2x16x128xbf16, #tpu.memory_space<vmem>>, %arg10: memref<2x16x128xbf16, #tpu.memory_space<vmem>>) attributes {dimension_semantics = [#tpu.dimension_semantics<parallel>], iteration_bounds = array<i64: 1>, scalar_prefetch = 0 : i64, scratch_operands = 3 : i64, tpu.core_type = #tpu.core_type<tc>, window_params = [{transform_indices = @transform_0, window_bounds = array<i64: 2, 16, 128>}, {pipeline_mode = #tpu.pipeline_mode<synchronous>, transform_indices = @transform_1, window_bounds = array<i64: 128, 128>}, {pipeline_mode = #tpu.pipeline_mode<synchronous>, transform_indices = @transform_2, window_bounds = array<i64: 128, 128>}, {pipeline_mode = #tpu.pipeline_mode<synchronous>, transform_indices = @transform_3, window_bounds = array<i64: 128, 128>}, {pipeline_mode = #tpu.pipeline_mode<synchronous>, transform_indices = @transform_4, window_bounds = array<i64: 128, 128>}, {pipeline_mode = #tpu.pipeline_mode<synchronous>, transform_indices = @transform_5, window_bounds = array<i64: 1, 128>}, {transform_indices = @transform_6, window_bounds = array<i64: 2, 16, 128>}]} {
    %c0 = arith.constant 0 : index
    %c0_0 = arith.constant 0 : index
    %c0_1 = arith.constant 0 : index
    %0 = vector.load %arg1[%c0, %c0_0, %c0_1] : memref<2x16x128xbf16, #tpu.memory_space<vmem>>, vector<2x16x128xbf16>
    %1 = vector.shape_cast %0 : vector<2x16x128xbf16> to vector<32x128xbf16>
    %c0_2 = arith.constant 0 : index
    %c0_3 = arith.constant 0 : index
    %2 = vector.load %arg2[%c0_2, %c0_3] : memref<128x128xbf16, #tpu.memory_space<vmem>>, vector<128x128xbf16>
    %cst = arith.constant dense<0.000000e+00> : vector<32x128xf32>
    %3 = tpu.matmul %1, %2, %cst {dimension_numbers = #tpu.dot_dimension_numbers<[1], [0], [0], [1], [0, 0, 1, 1], [], []>} : vector<32x128xbf16>, vector<128x128xbf16>, vector<32x128xf32> -> vector<32x128xf32>
    %4 = vector.shape_cast %3 : vector<32x128xf32> to vector<2x16x128xf32>
    %5 = arith.truncf %4 : vector<2x16x128xf32> to vector<2x16x128xbf16>
    %c0_4 = arith.constant 0 : index
    %c0_5 = arith.constant 0 : index
    %c0_6 = arith.constant 0 : index
    %6 = vector.load %arg8[%c0_4, %c0_5, %c0_6] : memref<2x16x128xbf16, #tpu.memory_space<vmem>>, vector<2x16x128xbf16>
    tpu.vector_store %arg8[%c0_4, %c0_5, %c0_6], %5 {strides = array<i32>} : memref<2x16x128xbf16, #tpu.memory_space<vmem>>, vector<2x16x128xbf16>,
    %c0_7 = arith.constant 0 : index
    %c0_8 = arith.constant 0 : index
    %7 = vector.load %arg3[%c0_7, %c0_8] : memref<128x128xbf16, #tpu.memory_space<vmem>>, vector<128x128xbf16>
    %cst_9 = arith.constant dense<0.000000e+00> : vector<32x128xf32>
    %8 = tpu.matmul %1, %7, %cst_9 {dimension_numbers = #tpu.dot_dimension_numbers<[1], [0], [0], [1], [0, 0, 1, 1], [], []>} : vector<32x128xbf16>, vector<128x128xbf16>, vector<32x128xf32> -> vector<32x128xf32>
    %9 = vector.shape_cast %8 : vector<32x128xf32> to vector<2x16x128xf32>
    %10 = arith.truncf %9 : vector<2x16x128xf32> to vector<2x16x128xbf16>
    %c0_10 = arith.constant 0 : index
    %c0_11 = arith.constant 0 : index
    %c0_12 = arith.constant 0 : index
    %11 = vector.load %arg9[%c0_10, %c0_11, %c0_12] : memref<2x16x128xbf16, #tpu.memory_space<vmem>>, vector<2x16x128xbf16>
    tpu.vector_store %arg9[%c0_10, %c0_11, %c0_12], %10 {strides = array<i32>} : memref<2x16x128xbf16, #tpu.memory_space<vmem>>, vector<2x16x128xbf16>,
    %c0_13 = arith.constant 0 : index
    %c0_14 = arith.constant 0 : index
    %12 = vector.load %arg4[%c0_13, %c0_14] : memref<128x128xbf16, #tpu.memory_space<vmem>>, vector<128x128xbf16>
    %cst_15 = arith.constant dense<0.000000e+00> : vector<32x128xf32>
    %13 = tpu.matmul %1, %12, %cst_15 {dimension_numbers = #tpu.dot_dimension_numbers<[1], [0], [0], [1], [0, 0, 1, 1], [], []>} : vector<32x128xbf16>, vector<128x128xbf16>, vector<32x128xf32> -> vector<32x128xf32>
    %14 = vector.shape_cast %13 : vector<32x128xf32> to vector<2x16x128xf32>
    %15 = arith.truncf %14 : vector<2x16x128xf32> to vector<2x16x128xbf16>
    %c0_16 = arith.constant 0 : index
    %c0_17 = arith.constant 0 : index
    %c0_18 = arith.constant 0 : index
    %16 = vector.load %arg10[%c0_16, %c0_17, %c0_18] : memref<2x16x128xbf16, #tpu.memory_space<vmem>>, vector<2x16x128xbf16>
    tpu.vector_store %arg10[%c0_16, %c0_17, %c0_18], %15 {strides = array<i32>} : memref<2x16x128xbf16, #tpu.memory_space<vmem>>, vector<2x16x128xbf16>,
    %c0_19 = arith.constant 0 : index
    %c0_20 = arith.constant 0 : index
    %17 = vector.load %arg5[%c0_19, %c0_20] : memref<128x128xbf16, #tpu.memory_space<vmem>>, vector<128x128xbf16>
    %c0_21 = arith.constant 0 : index
    %c0_22 = arith.constant 0 : index
    %18 = vector.load %arg6[%c0_21, %c0_22] : memref<1x128xf32, #tpu.memory_space<vmem>>, vector<1x128xf32>
    %19 = vector.shape_cast %18 : vector<1x128xf32> to vector<1x128xf32>
    %20 = vector.broadcast %19 : vector<1x128xf32> to vector<16x128xf32>
    %c0_i32 = arith.constant 0 : i32
    %21 = arith.index_cast %c0_i32 : i32 to index
    %c0_23 = arith.constant 0 : index
    %c0_24 = arith.constant 0 : index
    %22 = vector.load %arg8[%21, %c0_23, %c0_24] : memref<2x16x128xbf16, #tpu.memory_space<vmem>>, vector<1x16x128xbf16>
    %23 = vector.shape_cast %22 : vector<1x16x128xbf16> to vector<16x128xbf16>
    %24 = arith.index_cast %c0_i32 : i32 to index
    %c0_25 = arith.constant 0 : index
    %c0_26 = arith.constant 0 : index
    %25 = vector.load %arg9[%24, %c0_25, %c0_26] : memref<2x16x128xbf16, #tpu.memory_space<vmem>>, vector<1x16x128xbf16>
    %26 = vector.shape_cast %25 : vector<1x16x128xbf16> to vector<16x128xbf16>
    %27 = arith.index_cast %c0_i32 : i32 to index
    %c0_27 = arith.constant 0 : index
    %c0_28 = arith.constant 0 : index
    %28 = vector.load %arg10[%27, %c0_27, %c0_28] : memref<2x16x128xbf16, #tpu.memory_space<vmem>>, vector<1x16x128xbf16>
    %29 = vector.shape_cast %28 : vector<1x16x128xbf16> to vector<16x128xbf16>
    %30 = vector.extract_strided_slice %23 {offsets = [0, 0], sizes = [16, 32], strides = [1, 1]} : vector<16x128xbf16> to vector<16x32xbf16>
    %31 = vector.extract_strided_slice %26 {offsets = [0, 0], sizes = [16, 32], strides = [1, 1]} : vector<16x128xbf16> to vector<16x32xbf16>
    %cst_29 = arith.constant dense<0.000000e+00> : vector<16x16xf32>
    %32 = tpu.matmul %30, %31, %cst_29 {dimension_numbers = #tpu.dot_dimension_numbers<[1], [1], [0], [0], [0, 0, 1, 0], [], []>} : vector<16x32xbf16>, vector<16x32xbf16>, vector<16x16xf32> -> vector<16x16xf32>
    %cst_30 = arith.constant dense<0xFF800000> : vector<16xf32>
    %33 = vector.multi_reduction <maximumf>, %32, %cst_30 [1] : vector<16x16xf32> to vector<16xf32>
    %34 = vector.shape_cast %33 : vector<16xf32> to vector<16x1xf32>
    %35 = vector.broadcast %34 : vector<16x1xf32> to vector<16x16xf32>
    %36 = arith.subf %32, %35 : vector<16x16xf32>
    %37 = math.exp %36 : vector<16x16xf32>
    %cst_31 = arith.constant dense<0.000000e+00> : vector<16xf32>
    %38 = vector.multi_reduction <add>, %37, %cst_31 [1] : vector<16x16xf32> to vector<16xf32>
    %39 = vector.shape_cast %38 : vector<16xf32> to vector<16x1xf32>
    %40 = tpu.reciprocal %39 {approx = true} : vector<16x1xf32> -> vector<16x1xf32>
    %41 = vector.broadcast %40 : vector<16x1xf32> to vector<16x16xf32>
    %42 = arith.mulf %37, %41 : vector<16x16xf32>
    %43 = arith.truncf %42 : vector<16x16xf32> to vector<16x16xbf16>
    %44 = vector.extract_strided_slice %29 {offsets = [0, 0], sizes = [16, 32], strides = [1, 1]} : vector<16x128xbf16> to vector<16x32xbf16>
    %cst_32 = arith.constant dense<0.000000e+00> : vector<16x32xf32>
    %45 = tpu.matmul %43, %44, %cst_32 {dimension_numbers = #tpu.dot_dimension_numbers<[1], [0], [0], [1], [0, 0, 1, 1], [], []>} : vector<16x16xbf16>, vector<16x32xbf16>, vector<16x32xf32> -> vector<16x32xf32>
    %46 = arith.truncf %45 : vector<16x32xf32> to vector<16x32xbf16>
    %47 = vector.extract_strided_slice %17 {offsets = [0, 0], sizes = [32, 128], strides = [1, 1]} : vector<128x128xbf16> to vector<32x128xbf16>
    %cst_33 = arith.constant dense<0.000000e+00> : vector<16x128xf32>
    %48 = tpu.matmul %46, %47, %cst_33 {dimension_numbers = #tpu.dot_dimension_numbers<[1], [0], [0], [1], [0, 0, 1, 1], [], []>} : vector<16x32xbf16>, vector<32x128xbf16>, vector<16x128xf32> -> vector<16x128xf32>
    %49 = arith.addf %20, %48 : vector<16x128xf32>
    %50 = vector.extract_strided_slice %23 {offsets = [0, 32], sizes = [16, 32], strides = [1, 1]} : vector<16x128xbf16> to vector<16x32xbf16>
    %51 = vector.extract_strided_slice %26 {offsets = [0, 32], sizes = [16, 32], strides = [1, 1]} : vector<16x128xbf16> to vector<16x32xbf16>
    %cst_34 = arith.constant dense<0.000000e+00> : vector<16x16xf32>
    %52 = tpu.matmul %50, %51, %cst_34 {dimension_numbers = #tpu.dot_dimension_numbers<[1], [1], [0], [0], [0, 0, 1, 0], [], []>} : vector<16x32xbf16>, vector<16x32xbf16>, vector<16x16xf32> -> vector<16x16xf32>
    %cst_35 = arith.constant dense<0xFF800000> : vector<16xf32>
    %53 = vector.multi_reduction <maximumf>, %52, %cst_35 [1] : vector<16x16xf32> to vector<16xf32>
    %54 = vector.shape_cast %53 : vector<16xf32> to vector<16x1xf32>
    %55 = vector.broadcast %54 : vector<16x1xf32> to vector<16x16xf32>
    %56 = arith.subf %52, %55 : vector<16x16xf32>
    %57 = math.exp %56 : vector<16x16xf32>
    %cst_36 = arith.constant dense<0.000000e+00> : vector<16xf32>
    %58 = vector.multi_reduction <add>, %57, %cst_36 [1] : vector<16x16xf32> to vector<16xf32>
    %59 = vector.shape_cast %58 : vector<16xf32> to vector<16x1xf32>
    %60 = tpu.reciprocal %59 {approx = true} : vector<16x1xf32> -> vector<16x1xf32>
    %61 = vector.broadcast %60 : vector<16x1xf32> to vector<16x16xf32>
    %62 = arith.mulf %57, %61 : vector<16x16xf32>
    %63 = arith.truncf %62 : vector<16x16xf32> to vector<16x16xbf16>
    %64 = vector.extract_strided_slice %29 {offsets = [0, 32], sizes = [16, 32], strides = [1, 1]} : vector<16x128xbf16> to vector<16x32xbf16>
    %cst_37 = arith.constant dense<0.000000e+00> : vector<16x32xf32>
    %65 = tpu.matmul %63, %64, %cst_37 {dimension_numbers = #tpu.dot_dimension_numbers<[1], [0], [0], [1], [0, 0, 1, 1], [], []>} : vector<16x16xbf16>, vector<16x32xbf16>, vector<16x32xf32> -> vector<16x32xf32>
    %66 = arith.truncf %65 : vector<16x32xf32> to vector<16x32xbf16>
    %67 = vector.extract_strided_slice %17 {offsets = [32, 0], sizes = [32, 128], strides = [1, 1]} : vector<128x128xbf16> to vector<32x128xbf16>
    %cst_38 = arith.constant dense<0.000000e+00> : vector<16x128xf32>
    %68 = tpu.matmul %66, %67, %cst_38 {dimension_numbers = #tpu.dot_dimension_numbers<[1], [0], [0], [1], [0, 0, 1, 1], [], []>} : vector<16x32xbf16>, vector<32x128xbf16>, vector<16x128xf32> -> vector<16x128xf32>
    %69 = arith.addf %49, %68 : vector<16x128xf32>
    %70 = vector.extract_strided_slice %23 {offsets = [0, 64], sizes = [16, 32], strides = [1, 1]} : vector<16x128xbf16> to vector<16x32xbf16>
    %71 = vector.extract_strided_slice %26 {offsets = [0, 64], sizes = [16, 32], strides = [1, 1]} : vector<16x128xbf16> to vector<16x32xbf16>
    %cst_39 = arith.constant dense<0.000000e+00> : vector<16x16xf32>
    %72 = tpu.matmul %70, %71, %cst_39 {dimension_numbers = #tpu.dot_dimension_numbers<[1], [1], [0], [0], [0, 0, 1, 0], [], []>} : vector<16x32xbf16>, vector<16x32xbf16>, vector<16x16xf32> -> vector<16x16xf32>
    %cst_40 = arith.constant dense<0xFF800000> : vector<16xf32>
    %73 = vector.multi_reduction <maximumf>, %72, %cst_40 [1] : vector<16x16xf32> to vector<16xf32>
    %74 = vector.shape_cast %73 : vector<16xf32> to vector<16x1xf32>
    %75 = vector.broadcast %74 : vector<16x1xf32> to vector<16x16xf32>
    %76 = arith.subf %72, %75 : vector<16x16xf32>
    %77 = math.exp %76 : vector<16x16xf32>
    %cst_41 = arith.constant dense<0.000000e+00> : vector<16xf32>
    %78 = vector.multi_reduction <add>, %77, %cst_41 [1] : vector<16x16xf32> to vector<16xf32>
    %79 = vector.shape_cast %78 : vector<16xf32> to vector<16x1xf32>
    %80 = tpu.reciprocal %79 {approx = true} : vector<16x1xf32> -> vector<16x1xf32>
    %81 = vector.broadcast %80 : vector<16x1xf32> to vector<16x16xf32>
    %82 = arith.mulf %77, %81 : vector<16x16xf32>
    %83 = arith.truncf %82 : vector<16x16xf32> to vector<16x16xbf16>
    %84 = vector.extract_strided_slice %29 {offsets = [0, 64], sizes = [16, 32], strides = [1, 1]} : vector<16x128xbf16> to vector<16x32xbf16>
    %cst_42 = arith.constant dense<0.000000e+00> : vector<16x32xf32>
    %85 = tpu.matmul %83, %84, %cst_42 {dimension_numbers = #tpu.dot_dimension_numbers<[1], [0], [0], [1], [0, 0, 1, 1], [], []>} : vector<16x16xbf16>, vector<16x32xbf16>, vector<16x32xf32> -> vector<16x32xf32>
    %86 = arith.truncf %85 : vector<16x32xf32> to vector<16x32xbf16>
    %87 = vector.extract_strided_slice %17 {offsets = [64, 0], sizes = [32, 128], strides = [1, 1]} : vector<128x128xbf16> to vector<32x128xbf16>
    %cst_43 = arith.constant dense<0.000000e+00> : vector<16x128xf32>
    %88 = tpu.matmul %86, %87, %cst_43 {dimension_numbers = #tpu.dot_dimension_numbers<[1], [0], [0], [1], [0, 0, 1, 1], [], []>} : vector<16x32xbf16>, vector<32x128xbf16>, vector<16x128xf32> -> vector<16x128xf32>
    %89 = arith.addf %69, %88 : vector<16x128xf32>
    %90 = vector.extract_strided_slice %23 {offsets = [0, 96], sizes = [16, 32], strides = [1, 1]} : vector<16x128xbf16> to vector<16x32xbf16>
    %91 = vector.extract_strided_slice %26 {offsets = [0, 96], sizes = [16, 32], strides = [1, 1]} : vector<16x128xbf16> to vector<16x32xbf16>
    %cst_44 = arith.constant dense<0.000000e+00> : vector<16x16xf32>
    %92 = tpu.matmul %90, %91, %cst_44 {dimension_numbers = #tpu.dot_dimension_numbers<[1], [1], [0], [0], [0, 0, 1, 0], [], []>} : vector<16x32xbf16>, vector<16x32xbf16>, vector<16x16xf32> -> vector<16x16xf32>
    %cst_45 = arith.constant dense<0xFF800000> : vector<16xf32>
    %93 = vector.multi_reduction <maximumf>, %92, %cst_45 [1] : vector<16x16xf32> to vector<16xf32>
    %94 = vector.shape_cast %93 : vector<16xf32> to vector<16x1xf32>
    %95 = vector.broadcast %94 : vector<16x1xf32> to vector<16x16xf32>
    %96 = arith.subf %92, %95 : vector<16x16xf32>
    %97 = math.exp %96 : vector<16x16xf32>
    %cst_46 = arith.constant dense<0.000000e+00> : vector<16xf32>
    %98 = vector.multi_reduction <add>, %97, %cst_46 [1] : vector<16x16xf32> to vector<16xf32>
    %99 = vector.shape_cast %98 : vector<16xf32> to vector<16x1xf32>
    %100 = tpu.reciprocal %99 {approx = true} : vector<16x1xf32> -> vector<16x1xf32>
    %101 = vector.broadcast %100 : vector<16x1xf32> to vector<16x16xf32>
    %102 = arith.mulf %97, %101 : vector<16x16xf32>
    %103 = arith.truncf %102 : vector<16x16xf32> to vector<16x16xbf16>
    %104 = vector.extract_strided_slice %29 {offsets = [0, 96], sizes = [16, 32], strides = [1, 1]} : vector<16x128xbf16> to vector<16x32xbf16>
    %cst_47 = arith.constant dense<0.000000e+00> : vector<16x32xf32>
    %105 = tpu.matmul %103, %104, %cst_47 {dimension_numbers = #tpu.dot_dimension_numbers<[1], [0], [0], [1], [0, 0, 1, 1], [], []>} : vector<16x16xbf16>, vector<16x32xbf16>, vector<16x32xf32> -> vector<16x32xf32>
    %106 = arith.truncf %105 : vector<16x32xf32> to vector<16x32xbf16>
    %107 = vector.extract_strided_slice %17 {offsets = [96, 0], sizes = [32, 128], strides = [1, 1]} : vector<128x128xbf16> to vector<32x128xbf16>
    %cst_48 = arith.constant dense<0.000000e+00> : vector<16x128xf32>
    %108 = tpu.matmul %106, %107, %cst_48 {dimension_numbers = #tpu.dot_dimension_numbers<[1], [0], [0], [1], [0, 0, 1, 1], [], []>} : vector<16x32xbf16>, vector<32x128xbf16>, vector<16x128xf32> -> vector<16x128xf32>
    %109 = arith.addf %89, %108 : vector<16x128xf32>
    %110 = arith.index_cast %c0_i32 : i32 to index
    %c0_49 = arith.constant 0 : index
    %c0_50 = arith.constant 0 : index
    %111 = vector.load %arg7[%110, %c0_49, %c0_50] : memref<2x16x128xf32, #tpu.memory_space<vmem>>, vector<1x16x128xf32>
    %112 = vector.shape_cast %111 : vector<1x16x128xf32> to vector<16x128xf32>
    %113 = vector.shape_cast %109 : vector<16x128xf32> to vector<1x16x128xf32>
    tpu.vector_store %arg7[%110, %c0_49, %c0_50], %113 {strides = array<i32>} : memref<2x16x128xf32, #tpu.memory_space<vmem>>, vector<1x16x128xf32>,
    %c1_i32 = arith.constant 1 : i32
    %114 = arith.index_cast %c1_i32 : i32 to index
    %c0_51 = arith.constant 0 : index
    %c0_52 = arith.constant 0 : index
    %115 = vector.load %arg8[%114, %c0_51, %c0_52] : memref<2x16x128xbf16, #tpu.memory_space<vmem>>, vector<1x16x128xbf16>
    %116 = vector.shape_cast %115 : vector<1x16x128xbf16> to vector<16x128xbf16>
    %117 = arith.index_cast %c1_i32 : i32 to index
    %c0_53 = arith.constant 0 : index
    %c0_54 = arith.constant 0 : index
    %118 = vector.load %arg9[%117, %c0_53, %c0_54] : memref<2x16x128xbf16, #tpu.memory_space<vmem>>, vector<1x16x128xbf16>
    %119 = vector.shape_cast %118 : vector<1x16x128xbf16> to vector<16x128xbf16>
    %120 = arith.index_cast %c1_i32 : i32 to index
    %c0_55 = arith.constant 0 : index
    %c0_56 = arith.constant 0 : index
    %121 = vector.load %arg10[%120, %c0_55, %c0_56] : memref<2x16x128xbf16, #tpu.memory_space<vmem>>, vector<1x16x128xbf16>
    %122 = vector.shape_cast %121 : vector<1x16x128xbf16> to vector<16x128xbf16>
    %123 = vector.extract_strided_slice %116 {offsets = [0, 0], sizes = [16, 32], strides = [1, 1]} : vector<16x128xbf16> to vector<16x32xbf16>
    %124 = vector.extract_strided_slice %119 {offsets = [0, 0], sizes = [16, 32], strides = [1, 1]} : vector<16x128xbf16> to vector<16x32xbf16>
    %cst_57 = arith.constant dense<0.000000e+00> : vector<16x16xf32>
    %125 = tpu.matmul %123, %124, %cst_57 {dimension_numbers = #tpu.dot_dimension_numbers<[1], [1], [0], [0], [0, 0, 1, 0], [], []>} : vector<16x32xbf16>, vector<16x32xbf16>, vector<16x16xf32> -> vector<16x16xf32>
    %cst_58 = arith.constant dense<0xFF800000> : vector<16xf32>
    %126 = vector.multi_reduction <maximumf>, %125, %cst_58 [1] : vector<16x16xf32> to vector<16xf32>
    %127 = vector.shape_cast %126 : vector<16xf32> to vector<16x1xf32>
    %128 = vector.broadcast %127 : vector<16x1xf32> to vector<16x16xf32>
    %129 = arith.subf %125, %128 : vector<16x16xf32>
    %130 = math.exp %129 : vector<16x16xf32>
    %cst_59 = arith.constant dense<0.000000e+00> : vector<16xf32>
    %131 = vector.multi_reduction <add>, %130, %cst_59 [1] : vector<16x16xf32> to vector<16xf32>
    %132 = vector.shape_cast %131 : vector<16xf32> to vector<16x1xf32>
    %133 = tpu.reciprocal %132 {approx = true} : vector<16x1xf32> -> vector<16x1xf32>
    %134 = vector.broadcast %133 : vector<16x1xf32> to vector<16x16xf32>
    %135 = arith.mulf %130, %134 : vector<16x16xf32>
    %136 = arith.truncf %135 : vector<16x16xf32> to vector<16x16xbf16>
    %137 = vector.extract_strided_slice %122 {offsets = [0, 0], sizes = [16, 32], strides = [1, 1]} : vector<16x128xbf16> to vector<16x32xbf16>
    %cst_60 = arith.constant dense<0.000000e+00> : vector<16x32xf32>
    %138 = tpu.matmul %136, %137, %cst_60 {dimension_numbers = #tpu.dot_dimension_numbers<[1], [0], [0], [1], [0, 0, 1, 1], [], []>} : vector<16x16xbf16>, vector<16x32xbf16>, vector<16x32xf32> -> vector<16x32xf32>
    %139 = arith.truncf %138 : vector<16x32xf32> to vector<16x32xbf16>
    %140 = vector.extract_strided_slice %17 {offsets = [0, 0], sizes = [32, 128], strides = [1, 1]} : vector<128x128xbf16> to vector<32x128xbf16>
    %cst_61 = arith.constant dense<0.000000e+00> : vector<16x128xf32>
    %141 = tpu.matmul %139, %140, %cst_61 {dimension_numbers = #tpu.dot_dimension_numbers<[1], [0], [0], [1], [0, 0, 1, 1], [], []>} : vector<16x32xbf16>, vector<32x128xbf16>, vector<16x128xf32> -> vector<16x128xf32>
    %142 = arith.addf %20, %141 : vector<16x128xf32>
    %143 = vector.extract_strided_slice %116 {offsets = [0, 32], sizes = [16, 32], strides = [1, 1]} : vector<16x128xbf16> to vector<16x32xbf16>
    %144 = vector.extract_strided_slice %119 {offsets = [0, 32], sizes = [16, 32], strides = [1, 1]} : vector<16x128xbf16> to vector<16x32xbf16>
    %cst_62 = arith.constant dense<0.000000e+00> : vector<16x16xf32>
    %145 = tpu.matmul %143, %144, %cst_62 {dimension_numbers = #tpu.dot_dimension_numbers<[1], [1], [0], [0], [0, 0, 1, 0], [], []>} : vector<16x32xbf16>, vector<16x32xbf16>, vector<16x16xf32> -> vector<16x16xf32>
    %cst_63 = arith.constant dense<0xFF800000> : vector<16xf32>
    %146 = vector.multi_reduction <maximumf>, %145, %cst_63 [1] : vector<16x16xf32> to vector<16xf32>
    %147 = vector.shape_cast %146 : vector<16xf32> to vector<16x1xf32>
    %148 = vector.broadcast %147 : vector<16x1xf32> to vector<16x16xf32>
    %149 = arith.subf %145, %148 : vector<16x16xf32>
    %150 = math.exp %149 : vector<16x16xf32>
    %cst_64 = arith.constant dense<0.000000e+00> : vector<16xf32>
    %151 = vector.multi_reduction <add>, %150, %cst_64 [1] : vector<16x16xf32> to vector<16xf32>
    %152 = vector.shape_cast %151 : vector<16xf32> to vector<16x1xf32>
    %153 = tpu.reciprocal %152 {approx = true} : vector<16x1xf32> -> vector<16x1xf32>
    %154 = vector.broadcast %153 : vector<16x1xf32> to vector<16x16xf32>
    %155 = arith.mulf %150, %154 : vector<16x16xf32>
    %156 = arith.truncf %155 : vector<16x16xf32> to vector<16x16xbf16>
    %157 = vector.extract_strided_slice %122 {offsets = [0, 32], sizes = [16, 32], strides = [1, 1]} : vector<16x128xbf16> to vector<16x32xbf16>
    %cst_65 = arith.constant dense<0.000000e+00> : vector<16x32xf32>
    %158 = tpu.matmul %156, %157, %cst_65 {dimension_numbers = #tpu.dot_dimension_numbers<[1], [0], [0], [1], [0, 0, 1, 1], [], []>} : vector<16x16xbf16>, vector<16x32xbf16>, vector<16x32xf32> -> vector<16x32xf32>
    %159 = arith.truncf %158 : vector<16x32xf32> to vector<16x32xbf16>
    %160 = vector.extract_strided_slice %17 {offsets = [32, 0], sizes = [32, 128], strides = [1, 1]} : vector<128x128xbf16> to vector<32x128xbf16>
    %cst_66 = arith.constant dense<0.000000e+00> : vector<16x128xf32>
    %161 = tpu.matmul %159, %160, %cst_66 {dimension_numbers = #tpu.dot_dimension_numbers<[1], [0], [0], [1], [0, 0, 1, 1], [], []>} : vector<16x32xbf16>, vector<32x128xbf16>, vector<16x128xf32> -> vector<16x128xf32>
    %162 = arith.addf %142, %161 : vector<16x128xf32>
    %163 = vector.extract_strided_slice %116 {offsets = [0, 64], sizes = [16, 32], strides = [1, 1]} : vector<16x128xbf16> to vector<16x32xbf16>
    %164 = vector.extract_strided_slice %119 {offsets = [0, 64], sizes = [16, 32], strides = [1, 1]} : vector<16x128xbf16> to vector<16x32xbf16>
    %cst_67 = arith.constant dense<0.000000e+00> : vector<16x16xf32>
    %165 = tpu.matmul %163, %164, %cst_67 {dimension_numbers = #tpu.dot_dimension_numbers<[1], [1], [0], [0], [0, 0, 1, 0], [], []>} : vector<16x32xbf16>, vector<16x32xbf16>, vector<16x16xf32> -> vector<16x16xf32>
    %cst_68 = arith.constant dense<0xFF800000> : vector<16xf32>
    %166 = vector.multi_reduction <maximumf>, %165, %cst_68 [1] : vector<16x16xf32> to vector<16xf32>
    %167 = vector.shape_cast %166 : vector<16xf32> to vector<16x1xf32>
    %168 = vector.broadcast %167 : vector<16x1xf32> to vector<16x16xf32>
    %169 = arith.subf %165, %168 : vector<16x16xf32>
    %170 = math.exp %169 : vector<16x16xf32>
    %cst_69 = arith.constant dense<0.000000e+00> : vector<16xf32>
    %171 = vector.multi_reduction <add>, %170, %cst_69 [1] : vector<16x16xf32> to vector<16xf32>
    %172 = vector.shape_cast %171 : vector<16xf32> to vector<16x1xf32>
    %173 = tpu.reciprocal %172 {approx = true} : vector<16x1xf32> -> vector<16x1xf32>
    %174 = vector.broadcast %173 : vector<16x1xf32> to vector<16x16xf32>
    %175 = arith.mulf %170, %174 : vector<16x16xf32>
    %176 = arith.truncf %175 : vector<16x16xf32> to vector<16x16xbf16>
    %177 = vector.extract_strided_slice %122 {offsets = [0, 64], sizes = [16, 32], strides = [1, 1]} : vector<16x128xbf16> to vector<16x32xbf16>
    %cst_70 = arith.constant dense<0.000000e+00> : vector<16x32xf32>
    %178 = tpu.matmul %176, %177, %cst_70 {dimension_numbers = #tpu.dot_dimension_numbers<[1], [0], [0], [1], [0, 0, 1, 1], [], []>} : vector<16x16xbf16>, vector<16x32xbf16>, vector<16x32xf32> -> vector<16x32xf32>
    %179 = arith.truncf %178 : vector<16x32xf32> to vector<16x32xbf16>
    %180 = vector.extract_strided_slice %17 {offsets = [64, 0], sizes = [32, 128], strides = [1, 1]} : vector<128x128xbf16> to vector<32x128xbf16>
    %cst_71 = arith.constant dense<0.000000e+00> : vector<16x128xf32>
    %181 = tpu.matmul %179, %180, %cst_71 {dimension_numbers = #tpu.dot_dimension_numbers<[1], [0], [0], [1], [0, 0, 1, 1], [], []>} : vector<16x32xbf16>, vector<32x128xbf16>, vector<16x128xf32> -> vector<16x128xf32>
    %182 = arith.addf %162, %181 : vector<16x128xf32>
    %183 = vector.extract_strided_slice %116 {offsets = [0, 96], sizes = [16, 32], strides = [1, 1]} : vector<16x128xbf16> to vector<16x32xbf16>
    %184 = vector.extract_strided_slice %119 {offsets = [0, 96], sizes = [16, 32], strides = [1, 1]} : vector<16x128xbf16> to vector<16x32xbf16>
    %cst_72 = arith.constant dense<0.000000e+00> : vector<16x16xf32>
    %185 = tpu.matmul %183, %184, %cst_72 {dimension_numbers = #tpu.dot_dimension_numbers<[1], [1], [0], [0], [0, 0, 1, 0], [], []>} : vector<16x32xbf16>, vector<16x32xbf16>, vector<16x16xf32> -> vector<16x16xf32>
    %cst_73 = arith.constant dense<0xFF800000> : vector<16xf32>
    %186 = vector.multi_reduction <maximumf>, %185, %cst_73 [1] : vector<16x16xf32> to vector<16xf32>
    %187 = vector.shape_cast %186 : vector<16xf32> to vector<16x1xf32>
    %188 = vector.broadcast %187 : vector<16x1xf32> to vector<16x16xf32>
    %189 = arith.subf %185, %188 : vector<16x16xf32>
    %190 = math.exp %189 : vector<16x16xf32>
    %cst_74 = arith.constant dense<0.000000e+00> : vector<16xf32>
    %191 = vector.multi_reduction <add>, %190, %cst_74 [1] : vector<16x16xf32> to vector<16xf32>
    %192 = vector.shape_cast %191 : vector<16xf32> to vector<16x1xf32>
    %193 = tpu.reciprocal %192 {approx = true} : vector<16x1xf32> -> vector<16x1xf32>
    %194 = vector.broadcast %193 : vector<16x1xf32> to vector<16x16xf32>
    %195 = arith.mulf %190, %194 : vector<16x16xf32>
    %196 = arith.truncf %195 : vector<16x16xf32> to vector<16x16xbf16>
    %197 = vector.extract_strided_slice %122 {offsets = [0, 96], sizes = [16, 32], strides = [1, 1]} : vector<16x128xbf16> to vector<16x32xbf16>
    %cst_75 = arith.constant dense<0.000000e+00> : vector<16x32xf32>
    %198 = tpu.matmul %196, %197, %cst_75 {dimension_numbers = #tpu.dot_dimension_numbers<[1], [0], [0], [1], [0, 0, 1, 1], [], []>} : vector<16x16xbf16>, vector<16x32xbf16>, vector<16x32xf32> -> vector<16x32xf32>
    %199 = arith.truncf %198 : vector<16x32xf32> to vector<16x32xbf16>
    %200 = vector.extract_strided_slice %17 {offsets = [96, 0], sizes = [32, 128], strides = [1, 1]} : vector<128x128xbf16> to vector<32x128xbf16>
    %cst_76 = arith.constant dense<0.000000e+00> : vector<16x128xf32>
    %201 = tpu.matmul %199, %200, %cst_76 {dimension_numbers = #tpu.dot_dimension_numbers<[1], [0], [0], [1], [0, 0, 1, 1], [], []>} : vector<16x32xbf16>, vector<32x128xbf16>, vector<16x128xf32> -> vector<16x128xf32>
    %202 = arith.addf %182, %201 : vector<16x128xf32>
    %203 = arith.index_cast %c1_i32 : i32 to index
    %c0_77 = arith.constant 0 : index
    %c0_78 = arith.constant 0 : index
    %204 = vector.load %arg7[%203, %c0_77, %c0_78] : memref<2x16x128xf32, #tpu.memory_space<vmem>>, vector<1x16x128xf32>
    %205 = vector.shape_cast %204 : vector<1x16x128xf32> to vector<16x128xf32>
    %206 = vector.shape_cast %202 : vector<16x128xf32> to vector<1x16x128xf32>
    tpu.vector_store %arg7[%203, %c0_77, %c0_78], %206 {strides = array<i32>} : memref<2x16x128xf32, #tpu.memory_space<vmem>>, vector<1x16x128xf32>,
    %c2_i32 = arith.constant 2 : i32
    return
  }
  func.func @transform_0(%arg0: i32) -> (i32, i32, i32) {
    %c0_i32 = arith.constant 0 : i32
    %c0_i32_0 = arith.constant 0 : i32
    %c0_i32_1 = arith.constant 0 : i32
    return %arg0, %c0_i32, %c0_i32_0 : i32, i32, i32
  }
  func.func @transform_1(%arg0: i32) -> (i32, i32) {
    %c0_i32 = arith.constant 0 : i32
    %c0_i32_0 = arith.constant 0 : i32
    %c0_i32_1 = arith.constant 0 : i32
    return %c0_i32, %c0_i32_0 : i32, i32
  }
  func.func @transform_2(%arg0: i32) -> (i32, i32) {
    %c0_i32 = arith.constant 0 : i32
    %c0_i32_0 = arith.constant 0 : i32
    %c0_i32_1 = arith.constant 0 : i32
    return %c0_i32, %c0_i32_0 : i32, i32
  }
  func.func @transform_3(%arg0: i32) -> (i32, i32) {
    %c0_i32 = arith.constant 0 : i32
    %c0_i32_0 = arith.constant 0 : i32
    %c0_i32_1 = arith.constant 0 : i32
    return %c0_i32, %c0_i32_0 : i32, i32
  }
  func.func @transform_4(%arg0: i32) -> (i32, i32) {
    %c0_i32 = arith.constant 0 : i32
    %c0_i32_0 = arith.constant 0 : i32
    %c0_i32_1 = arith.constant 0 : i32
    return %c0_i32, %c0_i32_0 : i32, i32
  }
  func.func @transform_5(%arg0: i32) -> (i32, i32) {
    %c0_i32 = arith.constant 0 : i32
    %c0_i32_0 = arith.constant 0 : i32
    %c0_i32_1 = arith.constant 0 : i32
    return %c0_i32, %c0_i32_0 : i32, i32
  }
  func.func @transform_6(%arg0: i32) -> (i32, i32, i32) {
    %c0_i32 = arith.constant 0 : i32
    %c0_i32_0 = arith.constant 0 : i32
    %c0_i32_1 = arith.constant 0 : i32
    return %arg0, %c0_i32, %c0_i32_0 : i32, i32, i32
  }
}

</mosaic_0001>

<bundles_post_ra>
// kernel: tpu_custom_call.1
= control target key start
LH: loop header
LB: loop body
LE: loop exit
PB: predicated region body
PF: predicated region fallthrough
CT: control target
= control target key end

     0   :  { %11 = vsyncpa [#allocation6], 0  ;;  %s1955_s0 = inlined_call_operand.hbm [shape: bf16[2,16,128], index: 0, kind: input, shape index: {}]   ;;  %s1956_s1 = inlined_call_operand.hbm [shape: bf16[128,128], index: 1, kind: input, shape index: {}]   ;;  %s1957_s2 = inlined_call_operand.hbm [shape: bf16[128,128], index: 2, kind: input, shape index: {}]   ;;  %s1958_s3 = inlined_call_operand.hbm [shape: bf16[128,128], index: 3, kind: input, shape index: {}]   ;;  %s1959_s4 = inlined_call_operand.hbm [shape: bf16[128,128], index: 4, kind: input, shape index: {}]   ;;  %s1960_s5 = inlined_call_operand.vmem [shape: f32[1,128], index: 5, kind: input, shape index: {}]   ;;  %s1961_s6 = inlined_call_operand.hbm [shape: f32[2,16,128], index: 6, kind: output, shape index: {}]  }
   0x1   :  { %12 = vsyncpa [#allocation9], 0 }
   0x2   :  { %13 = vsyncpa [#allocation12], 0 }
   0x3   :  { %14 = vsyncpa [#allocation7], 0  ;;  %s32_s23 = sshll.u32 %s1956_s1, 4  ;;  %s1703_s24 = smov [#allocation8]   ;;  %s33_s23 = int_to_ptr.hbm [resolvable:$true] %s32_s23 }
   0x4   :  { %s34_s25 = sshll.u32 %s1703_s24, 4  ;;  %s58_s28 = sshll.u32 %s1958_s3, 4  ;;  %s35_s25 = int_to_ptr.vmem [resolvable:$true] %s34_s25  ;;  %s59_s28 = int_to_ptr.hbm [resolvable:$true] %s58_s28 }
   0x5   :  { %s1704_s29 = smov 64   ;;  %s1705_s30 = smov 4  }
   0x6   :  { %40 = dma.hbm_to_vmem [thread:$0]  %s33_s23, 1024, %s35_s25, [#allocation9], %s1704_s29, %s1704_s29, %s1705_s30  }
   0x7   :  { %s1706_s7 = smov [#allocation11]   ;;  %s19_s1 = sshll.u32 %s1955_s0, 4  ;;  %s20_s1 = int_to_ptr.hbm [resolvable:$true] %s19_s1 }
   0x8   :  { %s60_s8 = sshll.u32 %s1706_s7, 4  ;;  %s45_s3 = sshll.u32 %s1957_s2, 4  ;;  %s61_s8 = int_to_ptr.vmem [resolvable:$true] %s60_s8  ;;  %s46_s3 = int_to_ptr.hbm [resolvable:$true] %s45_s3 }
   0x9   :  { %66 = dma.hbm_to_vmem [thread:$0]  %s59_s28, 1024, %s61_s8, [#allocation12], %s1704_s29, %s1704_s29, %s1705_s30  }
   0xa   :  { %s1707_s13 = smov [#allocation5]   ;;  %s1708_s15 = smov [#allocation10]  }
   0xb   :  { %s21_s14 = sshll.u32 %s1707_s13, 4  ;;  %s47_s16 = sshll.u32 %s1708_s15, 4  ;;  %s22_s14 = int_to_ptr.vmem [resolvable:$true] %s21_s14  ;;  %s48_s16 = int_to_ptr.vmem [resolvable:$true] %s47_s16 }
   0xc   :  { %27 = dma.hbm_to_vmem [thread:$0]  %s20_s1, 256, %s22_s14, [#allocation6], %s1704_s29, %s1704_s29, %s1705_s30  }
   0xd   :  { %s71_s18 = sshll.u32 %s1959_s4, 4  ;;  %s1709_s19 = smov [#allocation13]   ;;  %s72_s18 = int_to_ptr.hbm [resolvable:$true] %s71_s18 }
   0xe   :  { %53 = dma.hbm_to_vmem [thread:$0]  %s46_s3, 1024, %s48_s16, [#allocation9], %s1704_s29, %s1704_s29, %s1705_s30  }
   0xf   :  { %s73_s2 = sshll.u32 %s1709_s19, 4  ;;  %s74_s2 = int_to_ptr.vmem [resolvable:$true] %s73_s2 }
  0x10   :  { %79 = dma.hbm_to_vmem [thread:$0]  %s72_s18, 1024, %s74_s2, [#allocation12], %s1704_s29, %s1704_s29, %s1705_s30  }
  0x11   :  { %1695 = dma.done.wait [#allocation6], 256  }
  0x12   :  { %1696 = vsyncadd [#allocation6], 4294967040 }
  0x13   :  { %1697 = dma.done.wait [#allocation9], 2048  }
  0x14   :  { %1698 = vsyncadd [#allocation9], 4294965248 }
  0x15   :  { %1699 = dma.done.wait [#allocation12], 2048  }
  0x16   :  { %1700 = vsyncadd [#allocation12], 4294965248  ;;  %v1410_v0 = vld [vmem:[#allocation8 + $0x38] sm:$0xff]  ;;  %v1409_v2 = vld [vmem:[#allocation8 + $0x30] sm:$0xff]  ;;  %vm428_vm0 = vcmask 261120   ;;  %s1710_s4 = smov 96  }
  0x17   :  { %v1418_v1 = vld [vmem:[#allocation10 + $0x38] sm:$0xff]  ;;  %183 = vmatpush.bf16.msra.mxu0 %v1410_v0  ;;  %v1417_v3 = vld [vmem:[#allocation10 + $0x30] sm:$0xff]  ;;  %v1408_v4 = vld [vmem:[#allocation8 + $0x28] sm:$0xff]  ;;  %vm449_vm1 = vcmask 130048   ;;  %s1711_s20 = smov 32   ;;  %s1202_s26 = sshll.u32 %s1961_s6, 4  ;;  %s1203_s26 = int_to_ptr.hbm [resolvable:$true] %s1202_s26 }
  0x18   :  { %274 = vmatpush.bf16.msra.mxu1 %v1418_v1  ;;  %v1416_v5 = vld [vmem:[#allocation10 + $0x28] sm:$0xff]  ;;  %v1407_v6 = vld [vmem:[#allocation8 + $0x20] sm:$0xff]  ;;  %v1406_v8 = vld [vmem:[#allocation8 + $0x18] sm:$0xff]  ;;  %s1713_s27 = smov 128   ;;  %s1714_s28 = smov 8  }
  0x19   :  { %v1415_v7 = vld [vmem:[#allocation10 + $0x20] sm:$0xff]  ;;  %v1414_v9 = vld [vmem:[#allocation10 + $0x18] sm:$0xff]  ;;  %v1405_v10 = vld [vmem:[#allocation8 + $0x10] sm:$0xff] }
  0x1a   :  { %v1413_v11 = vld [vmem:[#allocation10 + $0x10] sm:$0xff]  ;;  %v1404_v12 = vld [vmem:[#allocation8 + $0x8] sm:$0xff]  ;;  %v1403_v14 = vld [vmem:[#allocation8] sm:$0xff] }
  0x1b   :  { %184 = vmatpush.bf16.msra.mxu0 %v1409_v2  ;;  %v1412_v13 = vld [vmem:[#allocation10 + $0x8] sm:$0xff]  ;;  %v1411_v15 = vld [vmem:[#allocation10] sm:$0xff]  ;;  %v1401_v16 = vld [vmem:[#allocation5] sm:$0xff] }
  0x1c   :  { %275 = vmatpush.bf16.msra.mxu1 %v1417_v3  ;;  %v1426_v26 = vld [vmem:[#allocation11 + $0x38] sm:$0xff]  ;;  %v1425_v27 = vld [vmem:[#allocation11 + $0x30] sm:$0xff]  ;;  %v1424_v28 = vld [vmem:[#allocation11 + $0x28] sm:$0xff] }
  0x1d   :  { %365 = vmatpush.bf16.msra.mxu2 %v1426_v26  ;;  %v1423_v29 = vld [vmem:[#allocation11 + $0x20] sm:$0xff]  ;;  %v1422_v30 = vld [vmem:[#allocation11 + $0x18] sm:$0xff]  ;;  %v1421_v31 = vld [vmem:[#allocation11 + $0x10] sm:$0xff] }
  0x1e   :  { %v1420_v33 = vld [vmem:[#allocation11 + $0x8] sm:$0xff]  ;;  %v1419_v35 = vld [vmem:[#allocation11] sm:$0xff] }
  0x1f   :  { %185 = vmatpush.bf16.msra.mxu0 %v1408_v4  ;;  %v1794_v52 = vld [vmem:[#allocation13 + $0x8] sm:$0xff]  ;;  %v1797_v53 = vld [vmem:[#allocation13] sm:$0xff] }
  0x20   :  { %276 = vmatpush.bf16.msra.mxu1 %v1416_v5 }
  0x21   :  { %366 = vmatpush.bf16.msra.mxu2 %v1425_v27 }
  0x23   :  { %186 = vmatpush.bf16.msra.mxu0 %v1407_v6 }
  0x24   :  { %277 = vmatpush.bf16.msra.mxu1 %v1415_v7 }
  0x25   :  { %367 = vmatpush.bf16.msra.mxu2 %v1424_v28 }
  0x27   :  { %187 = vmatpush.bf16.msra.mxu0 %v1406_v8 }
  0x28   :  { %278 = vmatpush.bf16.msra.mxu1 %v1414_v9 }
  0x29   :  { %368 = vmatpush.bf16.msra.mxu2 %v1423_v29 }
  0x2b   :  { %188 = vmatpush.bf16.msra.mxu0 %v1405_v10 }
  0x2c   :  { %279 = vmatpush.bf16.msra.mxu1 %v1413_v11  ;;  %v1816_v11 = vld [vmem:[#allocation13 + $0x18] sm:$0xff] }
  0x2d   :  { %369 = vmatpush.bf16.msra.mxu2 %v1422_v30 }
  0x2f   :  { %189 = vmatpush.bf16.msra.mxu0 %v1404_v12 }
  0x30   :  { %280 = vmatpush.bf16.msra.mxu1 %v1412_v13 }
  0x31   :  { %370 = vmatpush.bf16.msra.mxu2 %v1421_v31 }
  0x33   :  { %190 = vmatpush.bf16.msra.mxu0 %v1403_v14  ;;  %v1819_v14 = vld [vmem:[#allocation13 + $0x10] sm:$0xff] }
  0x34   :  { %281 = vmatpush.bf16.msra.mxu1 %v1411_v15 }
  0x35   :  { %371 = vmatpush.bf16.msra.mxu2 %v1420_v33 }
  0x36   :  { %191 = vmatmul.bf16.vlgmr.msra.gmra.mxu0 %v1401_v16 }
  0x37   :  { %282 = vmatmul.bf16.vlgmr.msra.gmra.mxu1 %v1401_v16 }
  0x38   :  { %617 = vmatpush.bf16.msrb.mxu1 %v1816_v11 }
  0x39   :  { %372 = vmatpush.bf16.msra.mxu2 %v1419_v35 }
  0x3c   :  { %373 = vmatmul.bf16.vlgmr.msra.gmra.mxu2 %v1401_v16  ;;  %618 = vmatpush.bf16.msrb.mxu1 %v1819_v14 }
  0xb3   :  { %v192_v17 = vpop.f32.mrf.mxu0 }
  0xb4   :  { %v283_v18 = vpop.f32.mrf.mxu1 }
  0xbb   :  { %v194_v19 = vpop.f32.mrf.mxu0 }
  0xbc   :  { %v285_v20 = vpop.f32.mrf.mxu1  ;;  %v1444_v21 = vpack.c.bf16 %v194_v19, %v192_v17  ;;  %v1402_v19 = vld [vmem:[#allocation5 + $0x8] sm:$0xff] }
  0xbd   :  { %v1454_v22 = vpack.c.bf16 %v285_v20, %v283_v18  ;;  %196 = vmatmul.bf16.gmra.mxu0 %v1402_v19  ;;  %378 = vmatmul.bf16.gmra.mxu2 %v1402_v19 }
  0xbe   :  { %1445 = vst [vmem:[#allocation2] sm:$0xff] %v1444_v21   ;;  %287 = vmatmul.bf16.gmra.mxu1 %v1402_v19 }
  0xbf   :  { %1455 = vst [vmem:[#allocation3 + $0x8] sm:$0xff] %v1454_v22   ;;  %v374_v48 = vpop.f32.mrf.mxu2 }
  0xc5   :  { %v1781_v25 = vld [vmem:[#allocation2] sm:$0xff] }
  0xc6   :  { %v1775_v23 = vld [vmem:[#allocation3 + $0x8] sm:$0xff] }
  0xc7   :  { %530 = vrot.lane.b32.xlu2 %v1775_v23, %s1710_s4  ;;  %v433_v24 = vsel %vm428_vm0, %v1775_v23, 0  ;;  %v376_v49 = vpop.f32.mrf.mxu2 }
  0xc8   :  { %442 = vmatpush.bf16.xpose.msra.mxu3 %v433_v24  ;;  %v1464_v50 = vpack.c.bf16 %v376_v49, %v374_v48  ;;  %v1838_v49 = vld [vmem:[#allocation13 + $0x20] sm:$0xff] }
  0xca   :  { %1465 = vst [vmem:[#allocation4 + $0x8] sm:$0xff] %v1464_v50  }
  0xcf   :  { %528 = vrot.lane.b32.xlu2 %v1781_v25, %s1710_s4  ;;  %1329 = vmatmul.msk.bf16.vlgmr.msra.gmra.mxu3 %vm428_vm0, %v1781_v25 }
  0xd1   :  { %v1791_v51 = vld [vmem:[#allocation4 + $0x8] sm:$0xff] }
  0xd2   :  { %489 = vmatpush.bf16.msrb.mxu3 %v1791_v51 }
  0xd6   :  { %518 = vmatpush.bf16.msra.mxu3 %v1794_v52 }
  0xda   :  { %519 = vmatpush.bf16.msra.mxu3 %v1797_v53 }
 0x121   :  { %v531_v60 = vpop.permute.xlu2 %530 }
 0x122   :  { %v536_v62 = vsel %vm428_vm0, %v531_v60, 0 }
 0x129   :  { %v529_v2 = vpop.permute.xlu2 %528 }
 0x13a   :  { %v197_v33 = vpop.f32.mrf.mxu0 }
 0x142   :  { %v199_v35 = vpop.f32.mrf.mxu0 }
 0x152   :  { %v444_v32 = vpop.f32.mrf.mxu3 }
 0x153   :  { %v450_v34 = vsel %vm449_vm1, %v444_v32, -inf }
 0x154   :  { %451 = vmax.xlane.f32.xlu0 %v450_v34 }
 0x15a   :  { %v446_v36 = vpop.f32.mrf.mxu3 }
 0x15b   :  { %v453_v37 = vsel %vm449_vm1, %v446_v36, -inf }
 0x15c   :  { %454 = vmax.xlane.f32.xlu0 %v453_v37 }
 0x1c7   :  { %v452_v38 = vpop.xlane.xlu0 %451 }
 0x1c8   :  { %v456_v39 = vsub.f32 %v444_v32, %v452_v38  ;;  %v379_v38 = vpop.f32.mrf.mxu2 }
 0x1ca   :  { %v458_v40 = vmul.f32 1.442695, %v456_v39 }
 0x1cc   :  { %1487 = vpow2.f32 %v458_v40 }
 0x1cf   :  { %v455_v41 = vpop.xlane.xlu0 %454 }
 0x1d0   :  { %v457_v42 = vsub.f32 %v446_v36, %v455_v41  ;;  %v1449_v36 = vpack.c.bf16 %v199_v35, %v197_v33  ;;  %v381_v39 = vpop.f32.mrf.mxu2  ;;  %v288_v41 = vpop.f32.mrf.mxu1 }
 0x1d1   :  { %v1469_v40 = vpack.c.bf16 %v381_v39, %v379_v38 }
 0x1d2   :  { %v1488_v43 = vpop.eup %1487  ;;  %v460_v44 = vmul.f32 1.442695, %v457_v42  ;;  %1471 = vst [vmem:[#allocation2 + $0x8] sm:$0xff] %v1449_v36   ;;  %v1832_v42 = vld [vmem:[#allocation13 + $0x28] sm:$0xff] }
 0x1d3   :  { %v462_v45 = vsel %vm449_vm1, %v1488_v43, 0.0  ;;  %1473 = vst [vmem:[#allocation4] sm:$0xff] %v1469_v40  }
 0x1d4   :  { %1489 = vpow2.f32 %v460_v44  ;;  %463 = vadd.xlane.f32.xlu1 %v462_v45 }
 0x1d8   :  { %v290_v44 = vpop.f32.mrf.mxu1 }
 0x1d9   :  { %v1459_v45 = vpack.c.bf16 %v290_v44, %v288_v41 }
 0x1da   :  { %v1490_v46 = vpop.eup %1489 }
 0x1db   :  { %v465_v47 = vsel %vm449_vm1, %v1490_v46, 0.0  ;;  %1472 = vst [vmem:[#allocation3] sm:$0xff] %v1459_v45  }
 0x1dc   :  { %466 = vadd.xlane.f32.xlu1 %v465_v47 }
 0x1e2   :  { %v1836_v48 = vld [vmem:[#allocation3] sm:$0xff] }
 0x1e3   :  { %v850_v50 = vsel %vm428_vm0, %v1836_v48, 0 }
 0x247   :  { %v464_v54 = vpop.xlane.xlu1 %463 }
 0x248   :  { %1491 = vrcp.f32 %v464_v54 }
 0x24e   :  { %v1492_v56 = vpop.eup %1491 }
 0x24f   :  { %v467_v55 = vpop.xlane.xlu1 %466  ;;  %v470_v58 = vmul.f32 %v1492_v56, %v1488_v43 }
 0x250   :  { %1493 = vrcp.f32 %v467_v55 }
 0x256   :  { %v1494_v57 = vpop.eup %1493 }
 0x257   :  { %v471_v59 = vmul.f32 %v1494_v57, %v1490_v46  ;;  %v1847_v57 = vld [vmem:[#allocation4] sm:$0xff] }
 0x259   :  { %v472_v61 = vpack.c.bf16 %v471_v59, %v470_v58  ;;  %v1855_v58 = vld [vmem:[%s1960_s5] ss:$0 sm:$0xff]  ;;  %s1712_s5 = smov [#allocation14]  }
 0x25a   :  { %s1200_s23 = sshll.u32 %s1712_s5, 4  ;;  %s1201_s23 = int_to_ptr.vmem [resolvable:$true] %s1200_s23 }
 0x25b   :  { %1334 = vmatmul.msk.bf16.vlgmr.msrb.gmra.mxu3 %vm449_vm1, %v472_v61 }
 0x25c   :  { %545 = vmatpush.bf16.xpose.msrb.mxu3 %v536_v62 }
 0x2de   :  { %v491_v63 = vpop.f32.mrf.mxu3 }
 0x2e6   :  { %v493_v0 = vpop.f32.mrf.mxu3 }
 0x2e7   :  { %v496_v1 = vpack.c.bf16 %v493_v0, %v491_v63 }
 0x2e9   :  { %1343 = vmatmul.msk.bf16.vlgmr.msra.gmra.mxu3 %vm428_vm0, %v496_v1 }
 0x2f9   :  { %1344 = vmatmul.msk.bf16.vlgmr.msrb.gmra.mxu3 %vm428_vm0, %v529_v2 }
 0x36c   :  { %v1804_v3 = vpop.f32.mrf.mxu3 }
 0x36d   :  { %v526_v59 = vadd.f32 %v1855_v58, %v1804_v3 }
 0x374   :  { %v1806_v4 = vpop.f32.mrf.mxu3 }
 0x375   :  { %v527_v62 = vadd.f32 %v1855_v58, %v1806_v4 }
 0x37c   :  { %v547_v5 = vpop.f32.mrf.mxu3 }
 0x37d   :  { %v552_v6 = vsel %vm449_vm1, %v547_v5, -inf }
 0x37e   :  { %553 = vmax.xlane.f32.xlu0 %v552_v6 }
 0x384   :  { %v549_v7 = vpop.f32.mrf.mxu3 }
 0x385   :  { %v555_v8 = vsel %vm449_vm1, %v549_v7, -inf }
 0x386   :  { %556 = vmax.xlane.f32.xlu1 %v555_v8 }
 0x39f   :  { %575 = vrot.lane.b32.xlu1 %v1791_v51, %s1710_s4 }
 0x3a7   :  { %728 = vrot.lane.b32.xlu1 %v1775_v23, %s1711_s20 }
 0x3af   :  { %726 = vrot.lane.b32.xlu1 %v1781_v25, %s1711_s20 }
 0x3f1   :  { %v554_v9 = vpop.xlane.xlu0 %553 }
 0x3f2   :  { %v558_v10 = vsub.f32 %v547_v5, %v554_v9 }
 0x3f4   :  { %v560_v12 = vmul.f32 1.442695, %v558_v10 }
 0x3f6   :  { %1495 = vpow2.f32 %v560_v12  ;;  %v1871_v12 = vld [vmem:[#allocation2 + $0x8] sm:$0xff] }
 0x3f9   :  { %v557_v13 = vpop.xlane.xlu1 %556 }
 0x3fa   :  { %v559_v15 = vsub.f32 %v549_v7, %v557_v13 }
 0x3fc   :  { %v1496_v16 = vpop.eup %1495  ;;  %v562_v17 = vmul.f32 1.442695, %v559_v15 }
 0x3fd   :  { %v564_v18 = vsel %vm449_vm1, %v1496_v16, 0.0 }
 0x3fe   :  { %1497 = vpow2.f32 %v562_v17  ;;  %565 = vadd.xlane.f32.xlu2 %v564_v18 }
 0x404   :  { %v1498_v20 = vpop.eup %1497 }
 0x405   :  { %v567_v21 = vsel %vm449_vm1, %v1498_v20, 0.0 }
 0x406   :  { %568 = vadd.xlane.f32.xlu0 %v567_v21 }
 0x411   :  { %v576_v22 = vpop.permute.xlu1 %575 }
 0x412   :  { %588 = vmatpush.bf16.msrb.mxu0 %v576_v22 }
 0x416   :  { %716 = vmatpush.bf16.msra.mxu0 %v1832_v42 }
 0x419   :  { %v729_v24 = vpop.permute.xlu1 %728 }
 0x41a   :  { %v734_v26 = vsel %vm428_vm0, %v729_v24, 0  ;;  %629 = vrot.lane.b32.xlu0 %v1775_v23, %s1704_s29  ;;  %717 = vmatpush.bf16.msra.mxu0 %v1838_v49 }
 0x41b   :  { %743 = vmatpush.bf16.xpose.msra.mxu1 %v734_v26 }
 0x421   :  { %v727_v56 = vpop.permute.xlu1 %726 }
 0x422   :  { %627 = vrot.lane.b32.xlu0 %v1781_v25, %s1704_s29 }
 0x471   :  { %v566_v27 = vpop.xlane.xlu2 %565 }
 0x472   :  { %1499 = vrcp.f32 %v566_v27 }
 0x478   :  { %v1500_v29 = vpop.eup %1499 }
 0x479   :  { %v569_v28 = vpop.xlane.xlu0 %568  ;;  %v572_v31 = vmul.f32 %v1500_v29, %v1496_v16 }
 0x47a   :  { %1501 = vrcp.f32 %v569_v28 }
 0x480   :  { %v1502_v30 = vpop.eup %1501 }
 0x481   :  { %v573_v32 = vmul.f32 %v1502_v30, %v1498_v20 }
 0x483   :  { %v574_v34 = vpack.c.bf16 %v573_v32, %v572_v31 }
 0x485   :  { %1345 = vmatmul.msk.bf16.vlgmr.msrb.gmra.mxu0 %vm449_vm1, %v574_v34 }
 0x486   :  { %859 = vmatpush.bf16.xpose.msrb.mxu0 %v850_v50 }
 0x48c   :  { %v630_v37 = vpop.permute.xlu0 %629 }
 0x48d   :  { %v635_v23 = vsel %vm428_vm0, %v630_v37, 0 }
 0x48e   :  { %644 = vmatpush.bf16.xpose.msrb.mxu2 %v635_v23  ;;  %v1882_v23 = vld [vmem:[#allocation13 + $0x38] sm:$0xff] }
 0x494   :  { %v628_v25 = vpop.permute.xlu0 %627 }
 0x495   :  { %1355 = vmatmul.msk.bf16.vlgmr.msrb.gmra.mxu2 %vm428_vm0, %v628_v25 }
 0x502   :  { %v590_v43 = vpop.f32.mrf.mxu0 }
 0x50a   :  { %v592_v46 = vpop.f32.mrf.mxu0 }
 0x50b   :  { %v595_v47 = vpack.c.bf16 %v592_v46, %v590_v43  ;;  %v1885_v43 = vld [vmem:[#allocation13 + $0x30] sm:$0xff] }
 0x50d   :  { %1354 = vmatmul.msk.bf16.vlgmr.msrb.gmra.mxu1 %vm428_vm0, %v595_v47 }
 0x50e   :  { %905 = vmatpush.bf16.msrb.mxu1 %v1847_v57 }
 0x518   :  { %v646_v54 = vpop.f32.mrf.mxu2 }
 0x519   :  { %v651_v55 = vsel %vm449_vm1, %v646_v54, -inf }
 0x51a   :  { %652 = vmax.xlane.f32.xlu1 %v651_v55 }
 0x51d   :  { %1366 = vmatmul.msk.bf16.vlgmr.msra.gmra.mxu1 %vm428_vm0, %v727_v56 }
 0x51e   :  { %1009 = vmatpush.bf16.msra.mxu1 %v1816_v11 }
 0x520   :  { %v648_v8 = vpop.f32.mrf.mxu2 }
 0x521   :  { %v654_v3 = vsel %vm449_vm1, %v648_v8, -inf }
 0x522   :  { %1010 = vmatpush.bf16.msra.mxu1 %v1819_v14 }
 0x533   :  { %934 = vrot.lane.b32.xlu1 %v1836_v48, %s1710_s4 }
 0x58a   :  { %v620_v60 = vpop.f32.mrf.mxu1 }
 0x58b   :  { %v1859_v61 = vadd.f32 %v620_v60, %v526_v59 }
 0x58d   :  { %v653_v1 = vpop.xlane.xlu1 %652 }
 0x58e   :  { %v657_v2 = vsub.f32 %v646_v54, %v653_v1 }
 0x590   :  { %v659_v7 = vmul.f32 1.442695, %v657_v2 }
 0x592   :  { %v622_v63 = vpop.f32.mrf.mxu1  ;;  %1503 = vpow2.f32 %v659_v7 }
 0x593   :  { %v1863_v0 = vadd.f32 %v622_v63, %v527_v62 }
 0x598   :  { %v1504_v4 = vpop.eup %1503 }
 0x599   :  { %v663_v11 = vsel %vm449_vm1, %v1504_v4, 0.0 }
 0x59a   :  { %v745_v5 = vpop.f32.mrf.mxu1 }
 0x59b   :  { %v750_v6 = vsel %vm449_vm1, %v745_v5, -inf }
 0x59c   :  { %751 = vmax.xlane.f32.xlu2 %v750_v6 }
 0x5a2   :  { %v747_v9 = vpop.f32.mrf.mxu1 }
 0x5a3   :  { %v753_v10 = vsel %vm449_vm1, %v747_v9, -inf }
 0x5a4   :  { %655 = vmax.xlane.f32.xlu2 %v654_v3  ;;  %754 = vmax.xlane.f32.xlu0 %v753_v10 }
 0x5a5   :  { %v935_v44 = vpop.permute.xlu1 %934 }
 0x5a6   :  { %v940_v45 = vsel %vm428_vm0, %v935_v44, 0 }
 0x5ac   :  { %664 = vadd.xlane.f32.xlu2 %v663_v11 }
 0x5b8   :  { %773 = vrot.lane.b32.xlu0 %v1791_v51, %s1711_s20 }
 0x5c0   :  { %932 = vrot.lane.b32.xlu0 %v1871_v12, %s1710_s4 }
 0x60f   :  { %v752_v13 = vpop.xlane.xlu2 %751 }
 0x610   :  { %v756_v16 = vsub.f32 %v745_v5, %v752_v13 }
 0x612   :  { %v758_v18 = vmul.f32 1.442695, %v756_v16 }
 0x617   :  { %v656_v14 = vpop.xlane.xlu2 %655  ;;  %v755_v19 = vpop.xlane.xlu0 %754 }
 0x618   :  { %v658_v15 = vsub.f32 %v648_v8, %v656_v14  ;;  %v757_v21 = vsub.f32 %v747_v9, %v755_v19 }
 0x61a   :  { %v661_v17 = vmul.f32 1.442695, %v658_v15  ;;  %v760_v24 = vmul.f32 1.442695, %v757_v21 }
 0x61c   :  { %1505 = vpow2.f32 %v661_v17 }
 0x61d   :  { %1507 = vpow2.f32 %v758_v18 }
 0x61e   :  { %1509 = vpow2.f32 %v760_v24 }
 0x61f   :  { %v665_v31 = vpop.xlane.xlu2 %664 }
 0x622   :  { %v1506_v20 = vpop.eup %1505 }
 0x623   :  { %v666_v22 = vsel %vm449_vm1, %v1506_v20, 0.0  ;;  %v1508_v26 = vpop.eup %1507 }
 0x624   :  { %667 = vadd.xlane.f32.xlu2 %v666_v22  ;;  %v762_v28 = vsel %vm449_vm1, %v1508_v26, 0.0  ;;  %v1510_v29 = vpop.eup %1509 }
 0x625   :  { %v765_v30 = vsel %vm449_vm1, %v1510_v29, 0.0 }
 0x62a   :  { %v774_v27 = vpop.permute.xlu0 %773 }
 0x62b   :  { %786 = vmatpush.bf16.msra.mxu2 %v774_v27 }
 0x62c   :  { %763 = vadd.xlane.f32.xlu2 %v762_v28 }
 0x62f   :  { %922 = vmatpush.bf16.msrb.mxu2 %v1794_v52 }
 0x632   :  { %v933_v59 = vpop.permute.xlu0 %932 }
 0x633   :  { %923 = vmatpush.bf16.msrb.mxu2 %v1797_v53 }
 0x634   :  { %766 = vadd.xlane.f32.xlu2 %v765_v30 }
 0x64c   :  { %674 = vrot.lane.b32.xlu2 %v1791_v51, %s1704_s29 }
 0x697   :  { %v668_v32 = vpop.xlane.xlu2 %667 }
 0x698   :  { %1511 = vrcp.f32 %v668_v32 }
 0x699   :  { %1513 = vrcp.f32 %v665_v31 }
 0x69e   :  { %v1512_v35 = vpop.eup %1511 }
 0x69f   :  { %v764_v33 = vpop.xlane.xlu2 %763  ;;  %v1514_v36 = vpop.eup %1513  ;;  %v672_v37 = vmul.f32 %v1512_v35, %v1506_v20 }
 0x6a0   :  { %1515 = vrcp.f32 %v764_v33  ;;  %v671_v25 = vmul.f32 %v1514_v36, %v1504_v4 }
 0x6a2   :  { %v673_v51 = vpack.c.bf16 %v672_v37, %v671_v25 }
 0x6a6   :  { %v1516_v52 = vpop.eup %1515 }
 0x6a7   :  { %v767_v34 = vpop.xlane.xlu2 %766  ;;  %v770_v38 = vmul.f32 %v1516_v52, %v1508_v26 }
 0x6a8   :  { %1517 = vrcp.f32 %v767_v34 }
 0x6ae   :  { %v1518_v53 = vpop.eup %1517 }
 0x6af   :  { %v771_v39 = vmul.f32 %v1518_v53, %v1510_v29  ;;  %v675_v40 = vpop.permute.xlu2 %674 }
 0x6b0   :  { %687 = vmatpush.bf16.msra.mxu3 %v675_v40 }
 0x6b1   :  { %v772_v41 = vpack.c.bf16 %v771_v39, %v770_v38 }
 0x6b3   :  { %1356 = vmatmul.msk.bf16.vlgmr.msra.gmra.mxu3 %vm449_vm1, %v673_v51  ;;  %1367 = vmatmul.msk.bf16.vlgmr.msra.gmra.mxu2 %vm449_vm1, %v772_v41 }
 0x6b4   :  { %815 = vmatpush.bf16.msrb.mxu3 %v1882_v23 }
 0x6b8   :  { %816 = vmatpush.bf16.msrb.mxu3 %v1885_v43 }
 0x6bc   :  { %949 = vmatpush.bf16.xpose.msra.mxu3 %v940_v45 }
 0x736   :  { %v689_v46 = vpop.f32.mrf.mxu3  ;;  %v788_v47 = vpop.f32.mrf.mxu2 }
 0x73e   :  { %v691_v50 = vpop.f32.mrf.mxu3  ;;  %v790_v54 = vpop.f32.mrf.mxu2 }
 0x73f   :  { %v694_v55 = vpack.c.bf16 %v691_v50, %v689_v46  ;;  %v793_v56 = vpack.c.bf16 %v790_v54, %v788_v47 }
 0x741   :  { %1365 = vmatmul.msk.bf16.vlgmr.msra.gmra.mxu0 %vm428_vm0, %v694_v55  ;;  %1376 = vmatmul.msk.bf16.vlgmr.msrb.gmra.mxu3 %vm428_vm0, %v793_v56 }
 0x751   :  { %1385 = vmatmul.msk.bf16.vlgmr.msrb.gmra.mxu0 %vm428_vm0, %v1871_v12  ;;  %1392 = vmatmul.msk.bf16.vlgmr.msra.gmra.mxu3 %vm428_vm0, %v933_v59 }
 0x7be   :  { %v719_v60 = vpop.f32.mrf.mxu0 }
 0x7bf   :  { %v724_v62 = vadd.f32 %v719_v60, %v1859_v61 }
 0x7c4   :  { %v818_v63 = vpop.f32.mrf.mxu3 }
 0x7c5   :  { %v823_v1 = vadd.f32 %v818_v63, %v724_v62 }
 0x7c6   :  { %v721_v2 = vpop.f32.mrf.mxu0 }
 0x7c7   :  { %825 = vst [vmem:[#allocation14] sm:$0xff] %v823_v1  ;;  %v725_v5 = vadd.f32 %v721_v2, %v1863_v0 }
 0x7cc   :  { %v820_v6 = vpop.f32.mrf.mxu3 }
 0x7cd   :  { %v824_v7 = vadd.f32 %v820_v6, %v725_v5 }
 0x7ce   :  { %v861_v8 = vpop.f32.mrf.mxu0 }
 0x7cf   :  { %826 = vst [vmem:[#allocation14 + $0x8] sm:$0xff] %v824_v7  ;;  %v866_v9 = vsel %vm449_vm1, %v861_v8, -inf }
 0x7d0   :  { %867 = vmax.xlane.f32.xlu2 %v866_v9 }
 0x7d4   :  { %v951_v3 = vpop.f32.mrf.mxu3 }
 0x7d5   :  { %v956_v10 = vsel %vm449_vm1, %v951_v3, -inf }
 0x7d6   :  { %957 = vmax.xlane.f32.xlu1 %v956_v10  ;;  %v863_v4 = vpop.f32.mrf.mxu0 }
 0x7d7   :  { %v869_v61 = vsel %vm449_vm1, %v863_v4, -inf }
 0x7d8   :  { %870 = vmax.xlane.f32.xlu0 %v869_v61 }
 0x7dc   :  { %v953_v11 = vpop.f32.mrf.mxu3 }
 0x7dd   :  { %v959_v13 = vsel %vm449_vm1, %v953_v11, -inf }
 0x7de   :  { %960 = vmax.xlane.f32.xlu2 %v959_v13 }
 0x843   :  { %v868_v0 = vpop.xlane.xlu2 %867 }
 0x844   :  { %v872_v14 = vsub.f32 %v861_v8, %v868_v0 }
 0x846   :  { %v874_v15 = vmul.f32 1.442695, %v872_v14 }
 0x848   :  { %1519 = vpow2.f32 %v874_v15 }
 0x849   :  { %v958_v16 = vpop.xlane.xlu1 %957 }
 0x84a   :  { %v962_v17 = vsub.f32 %v951_v3, %v958_v16 }
 0x84b   :  { %v871_v18 = vpop.xlane.xlu0 %870 }
 0x84c   :  { %v964_v19 = vmul.f32 1.442695, %v962_v17  ;;  %v873_v20 = vsub.f32 %v863_v4, %v871_v18 }
 0x84e   :  { %v1520_v21 = vpop.eup %1519  ;;  %1521 = vpow2.f32 %v964_v19  ;;  %v876_v22 = vmul.f32 1.442695, %v873_v20 }
 0x84f   :  { %v878_v24 = vsel %vm449_vm1, %v1520_v21, 0.0 }
 0x850   :  { %1523 = vpow2.f32 %v876_v22  ;;  %879 = vadd.xlane.f32.xlu0 %v878_v24 }
 0x851   :  { %v961_v26 = vpop.xlane.xlu2 %960 }
 0x852   :  { %v963_v27 = vsub.f32 %v953_v11, %v961_v26 }
 0x854   :  { %v1522_v28 = vpop.eup %1521  ;;  %v966_v29 = vmul.f32 1.442695, %v963_v27 }
 0x855   :  { %v968_v30 = vsel %vm449_vm1, %v1522_v28, 0.0 }
 0x856   :  { %v1524_v31 = vpop.eup %1523  ;;  %1525 = vpow2.f32 %v966_v29  ;;  %969 = vadd.xlane.f32.xlu2 %v968_v30 }
 0x857   :  { %v881_v32 = vsel %vm449_vm1, %v1524_v31, 0.0 }
 0x858   :  { %882 = vadd.xlane.f32.xlu1 %v881_v32 }
 0x85c   :  { %v1526_v33 = vpop.eup %1525 }
 0x85d   :  { %v971_v34 = vsel %vm449_vm1, %v1526_v33, 0.0 }
 0x85e   :  { %972 = vadd.xlane.f32.xlu0 %v971_v34 }
 0x86e   :  { %1021 = vrot.lane.b32.xlu2 %v1836_v48, %s1704_s29 }
 0x871   :  { %979 = vrot.lane.b32.xlu1 %v1847_v57, %s1710_s4 }
 0x872   :  { %1108 = vrot.lane.b32.xlu0 %v1836_v48, %s1711_s20 }
 0x879   :  { %1019 = vrot.lane.b32.xlu1 %v1871_v12, %s1704_s29 }
 0x87a   :  { %1106 = vrot.lane.b32.xlu0 %v1871_v12, %s1711_s20 }
 0x8c3   :  { %v880_v35 = vpop.xlane.xlu0 %879 }
 0x8c4   :  { %1527 = vrcp.f32 %v880_v35 }
 0x8c9   :  { %v970_v36 = vpop.xlane.xlu2 %969 }
 0x8ca   :  { %v1528_v37 = vpop.eup %1527 }
 0x8cb   :  { %v883_v52 = vpop.xlane.xlu1 %882  ;;  %v886_v39 = vmul.f32 %v1528_v37, %v1520_v21 }
 0x8cc   :  { %1529 = vrcp.f32 %v883_v52 }
 0x8d1   :  { %v1022_v53 = vpop.permute.xlu2 %1021  ;;  %v973_v51 = vpop.xlane.xlu0 %972 }
 0x8d2   :  { %v1530_v25 = vpop.eup %1529  ;;  %v1027_v38 = vsel %vm428_vm0, %v1022_v53, 0  ;;  %1531 = vrcp.f32 %v973_v51 }
 0x8d3   :  { %v887_v40 = vmul.f32 %v1530_v25, %v1524_v31  ;;  %1036 = vmatpush.bf16.xpose.msra.mxu2 %v1027_v38  ;;  %1533 = vrcp.f32 %v970_v36 }
 0x8d5   :  { %v888_v48 = vpack.c.bf16 %v887_v40, %v886_v39 }
 0x8d7   :  { %1390 = vmatmul.msk.bf16.vlgmr.msrb.gmra.mxu1 %vm449_vm1, %v888_v48 }
 0x8d8   :  { %v1532_v12 = vpop.eup %1531 }
 0x8d9   :  { %v1534_v41 = vpop.eup %1533  ;;  %v977_v44 = vmul.f32 %v1532_v12, %v1526_v33 }
 0x8da   :  { %v976_v45 = vmul.f32 %v1534_v41, %v1522_v28 }
 0x8dc   :  { %v978_v50 = vpack.c.bf16 %v977_v44, %v976_v45 }
 0x8e3   :  { %v980_v46 = vpop.permute.xlu1 %979 }
 0x8e4   :  { %992 = vmatpush.bf16.msra.mxu0 %v980_v46  ;;  %v1109_v47 = vpop.permute.xlu0 %1108 }
 0x8e5   :  { %v1114_v54 = vsel %vm428_vm0, %v1109_v47, 0 }
 0x8e6   :  { %1123 = vmatpush.bf16.xpose.msrb.mxu1 %v1114_v54 }
 0x8e7   :  { %1393 = vmatmul.msk.bf16.vlgmr.msra.gmra.mxu0 %vm449_vm1, %v978_v50 }
 0x8e8   :  { %1096 = vmatpush.bf16.msrb.mxu0 %v1832_v42 }
 0x8eb   :  { %v1020_v1 = vpop.permute.xlu1 %1019 }
 0x8ec   :  { %1097 = vmatpush.bf16.msrb.mxu0 %v1838_v49  ;;  %v1107_v2 = vpop.permute.xlu0 %1106 }
 0x954   :  { %v907_v55 = vpop.f32.mrf.mxu1 }
 0x95c   :  { %v909_v56 = vpop.f32.mrf.mxu1 }
 0x95d   :  { %v912_v59 = vpack.c.bf16 %v909_v56, %v907_v55 }
 0x95f   :  { %1391 = vmatmul.msk.bf16.vlgmr.msrb.gmra.mxu2 %vm428_vm0, %v912_v59 }
 0x964   :  { %v994_v60 = vpop.f32.mrf.mxu0 }
 0x96c   :  { %v996_v62 = vpop.f32.mrf.mxu0 }
 0x96d   :  { %v999_v63 = vpack.c.bf16 %v996_v62, %v994_v60 }
 0x96f   :  { %1394 = vmatmul.msk.bf16.vlgmr.msra.gmra.mxu1 %vm428_vm0, %v999_v63  ;;  %1395 = vmatmul.msk.bf16.vlgmr.msra.gmra.mxu2 %vm428_vm0, %v1020_v1 }
 0x97f   :  { %1398 = vmatmul.msk.bf16.vlgmr.msrb.gmra.mxu1 %vm428_vm0, %v1107_v2 }
 0x9e2   :  { %v925_v42 = vpop.f32.mrf.mxu2 }
 0x9e3   :  { %v930_v49 = vadd.f32 %v1855_v58, %v925_v42 }
 0x9ea   :  { %v927_v5 = vpop.f32.mrf.mxu2 }
 0x9eb   :  { %v931_v9 = vadd.f32 %v1855_v58, %v927_v5 }
 0x9ec   :  { %v1012_v6 = vpop.f32.mrf.mxu1 }
 0x9ed   :  { %v1927_v7 = vadd.f32 %v1012_v6, %v930_v49 }
 0x9f2   :  { %v1038_v8 = vpop.f32.mrf.mxu2 }
 0x9f3   :  { %v1043_v3 = vsel %vm449_vm1, %v1038_v8, -inf }
 0x9f4   :  { %1044 = vmax.xlane.f32.xlu0 %v1043_v3  ;;  %v1014_v10 = vpop.f32.mrf.mxu1 }
 0x9f5   :  { %v1931_v4 = vadd.f32 %v1014_v10, %v931_v9 }
 0x9fa   :  { %v1040_v13 = vpop.f32.mrf.mxu2 }
 0x9fb   :  { %v1046_v14 = vsel %vm449_vm1, %v1040_v13, -inf }
 0x9fc   :  { %v1125_v61 = vpop.f32.mrf.mxu1 }
 0x9fd   :  { %v1130_v11 = vsel %vm449_vm1, %v1125_v61, -inf }
 0x9fe   :  { %1131 = vmax.xlane.f32.xlu2 %v1130_v11 }
 0xa04   :  { %v1127_v0 = vpop.f32.mrf.mxu1 }
 0xa05   :  { %v1133_v15 = vsel %vm449_vm1, %v1127_v0, -inf }
 0xa06   :  { %1047 = vmax.xlane.f32.xlu2 %v1046_v14  ;;  %1134 = vmax.xlane.f32.xlu1 %v1133_v15 }
 0xa67   :  { %v1045_v16 = vpop.xlane.xlu0 %1044 }
 0xa68   :  { %v1049_v58 = vsub.f32 %v1038_v8, %v1045_v16 }
 0xa6a   :  { %v1051_v17 = vmul.f32 1.442695, %v1049_v58 }
 0xa6c   :  { %1535 = vpow2.f32 %v1051_v17 }
 0xa71   :  { %v1132_v18 = vpop.xlane.xlu2 %1131 }
 0xa72   :  { %v1536_v19 = vpop.eup %1535  ;;  %v1136_v20 = vsub.f32 %v1125_v61, %v1132_v18 }
 0xa73   :  { %v1055_v21 = vsel %vm449_vm1, %v1536_v19, 0.0 }
 0xa74   :  { %v1138_v22 = vmul.f32 1.442695, %v1136_v20  ;;  %1056 = vadd.xlane.f32.xlu2 %v1055_v21 }
 0xa76   :  { %1537 = vpow2.f32 %v1138_v22 }
 0xa79   :  { %v1048_v24 = vpop.xlane.xlu2 %1047  ;;  %v1135_v26 = vpop.xlane.xlu1 %1134 }
 0xa7a   :  { %v1050_v27 = vsub.f32 %v1040_v13, %v1048_v24  ;;  %v1137_v28 = vsub.f32 %v1127_v0, %v1135_v26 }
 0xa7c   :  { %v1538_v29 = vpop.eup %1537  ;;  %v1053_v30 = vmul.f32 1.442695, %v1050_v27  ;;  %v1140_v31 = vmul.f32 1.442695, %v1137_v28 }
 0xa7d   :  { %v1142_v32 = vsel %vm449_vm1, %v1538_v29, 0.0 }
 0xa7e   :  { %1539 = vpow2.f32 %v1053_v30  ;;  %1143 = vadd.xlane.f32.xlu1 %v1142_v32 }
 0xa7f   :  { %1541 = vpow2.f32 %v1140_v31 }
 0xa84   :  { %v1540_v33 = vpop.eup %1539 }
 0xa85   :  { %v1542_v34 = vpop.eup %1541  ;;  %v1058_v35 = vsel %vm449_vm1, %v1540_v33, 0.0 }
 0xa86   :  { %1059 = vadd.xlane.f32.xlu1 %v1058_v35  ;;  %v1145_v36 = vsel %vm449_vm1, %v1542_v34, 0.0 }
 0xa87   :  { %1146 = vadd.xlane.f32.xlu0 %v1145_v36 }
 0xa8c   :  { %1066 = vrot.lane.b32.xlu2 %v1847_v57, %s1704_s29 }
 0xa9b   :  { %1153 = vrot.lane.b32.xlu0 %v1847_v57, %s1711_s20 }
 0xae7   :  { %v1057_v52 = vpop.xlane.xlu2 %1056 }
 0xae8   :  { %1543 = vrcp.f32 %v1057_v52 }
 0xaee   :  { %v1544_v38 = vpop.eup %1543 }
 0xaef   :  { %v1067_v37 = vpop.permute.xlu2 %1066  ;;  %v1063_v48 = vmul.f32 %v1544_v38, %v1536_v19 }
 0xaf0   :  { %1079 = vmatpush.bf16.msrb.mxu3 %v1067_v37 }
 0xaf1   :  { %v1144_v53 = vpop.xlane.xlu1 %1143 }
 0xaf4   :  { %1183 = vmatpush.bf16.msra.mxu3 %v1882_v23 }
 0xaf8   :  { %1184 = vmatpush.bf16.msra.mxu3 %v1885_v43 }
 0xaf9   :  { %v1060_v25 = vpop.xlane.xlu1 %1059 }
 0xafa   :  { %1545 = vrcp.f32 %v1060_v25  ;;  %v1147_v39 = vpop.xlane.xlu0 %1146 }
 0xafb   :  { %1547 = vrcp.f32 %v1147_v39 }
 0xafc   :  { %1549 = vrcp.f32 %v1144_v53 }
 0xb00   :  { %v1546_v40 = vpop.eup %1545 }
 0xb01   :  { %v1064_v51 = vmul.f32 %v1546_v40, %v1540_v33  ;;  %v1548_v57 = vpop.eup %1547 }
 0xb02   :  { %v1550_v41 = vpop.eup %1549  ;;  %v1151_v44 = vmul.f32 %v1548_v57, %v1542_v34 }
 0xb03   :  { %v1065_v12 = vpack.c.bf16 %v1064_v51, %v1063_v48  ;;  %v1150_v45 = vmul.f32 %v1550_v41, %v1538_v29 }
 0xb05   :  { %1396 = vmatmul.msk.bf16.vlgmr.msrb.gmra.mxu3 %vm449_vm1, %v1065_v12  ;;  %v1152_v43 = vpack.c.bf16 %v1151_v44, %v1150_v45 }
 0xb0d   :  { %v1154_v23 = vpop.permute.xlu0 %1153 }
 0xb0e   :  { %1166 = vmatpush.bf16.msrb.mxu2 %v1154_v23 }
 0xb11   :  { %1399 = vmatmul.msk.bf16.vlgmr.msrb.gmra.mxu2 %vm449_vm1, %v1152_v43 }
 0xb88   :  { %v1081_v46 = vpop.f32.mrf.mxu3 }
 0xb90   :  { %v1083_v47 = vpop.f32.mrf.mxu3 }
 0xb91   :  { %v1086_v50 = vpack.c.bf16 %v1083_v47, %v1081_v46 }
 0xb93   :  { %1397 = vmatmul.msk.bf16.vlgmr.msrb.gmra.mxu0 %vm428_vm0, %v1086_v50 }
 0xb94   :  { %v1168_v54 = vpop.f32.mrf.mxu2 }
 0xb9c   :  { %v1170_v55 = vpop.f32.mrf.mxu2 }
 0xb9d   :  { %v1173_v56 = vpack.c.bf16 %v1170_v55, %v1168_v54 }
 0xb9f   :  { %1400 = vmatmul.msk.bf16.vlgmr.msra.gmra.mxu3 %vm428_vm0, %v1173_v56 }
 0xc10   :  { %v1099_v59 = vpop.f32.mrf.mxu0 }
 0xc11   :  { %v1104_v60 = vadd.f32 %v1099_v59, %v1927_v7 }
 0xc18   :  { %v1101_v1 = vpop.f32.mrf.mxu0 }
 0xc19   :  { %v1105_v2 = vadd.f32 %v1101_v1, %v1931_v4 }
 0xc22   :  { %v1186_v62 = vpop.f32.mrf.mxu3 }
 0xc23   :  { %v1191_v63 = vadd.f32 %v1186_v62, %v1104_v60 }
 0xc25   :  { %1194 = vst [vmem:[#allocation14 + $0x10] sm:$0xff] %v1191_v63 }
 0xc2a   :  { %v1188_v42 = vpop.f32.mrf.mxu3 }
 0xc2b   :  { %v1192_v5 = vadd.f32 %v1188_v42, %v1105_v2 }
 0xc2d   :  { %1195 = vst [vmem:[#allocation14 + $0x18] sm:$0xff] %v1192_v5 }
 0xc2e   :  { %1208 = dma.vmem_to_hbm [thread:$0]  %s1201_s23, 512, %s1203_s26, [#allocation7], %s1713_s27, %s1713_s27, %s1714_s28  }
 0xc2f   :  { %1701 = dma.done.wait [#allocation7], 512  }
 0xc30   :  { %1702 = vsyncadd [#allocation7], 4294966784 }
 0xc31   :  { %1213 = vsyncpa [#allocation6], 1 }
 0xc32   :  { %1214 = vsyncpa [#allocation9], 1 }
 0xc33   :  { %1215 = vsyncpa [#allocation12], 1 }
 0xc34   :  { %1216 = vsyncpa [#allocation7], 1 }

</bundles_post_ra>
